<compile_context>
chip_gen: v7x
topology: tpu7x:2x2x1
jax: 0.10.0
libtpu: 0.0.40
codegen_flags: <defaults>
</compile_context>

<pallas_src>
import functools

import jax
import jax.numpy as jnp
from jax.experimental import pallas as pl
from jax.experimental.pallas import tpu as pltpu


# ----------------------------------------------------------------------------
# Fused kernel: news-MLP (candidates + history) + user mean-pool + -L2 scoring
# ----------------------------------------------------------------------------
def fused_news_rec_kernel(cand_ref, hist_ref, w1_ref, b1_ref, w2_ref, b2_ref,
                          out_ref, *, tile_users, cands_per_user):
    """One grid step = one tile of `tile_users` users.

    cand_ref : (tu*C, F) bf16   candidate features (user-major rows)
    hist_ref : (tu*T, F) bf16   history features   (user-major rows)
    w1_ref   : (F, H) bf16 (resident)     b1_ref : (1, H) f32 (resident)
    w2_ref   : (H, E) bf16 (resident)     b2_ref : (1, E) f32 (resident)
    out_ref  : (1, 1, tu*C) f32  lane-dense scores, user-major / cand-minor
    """
    tu, c = tile_users, cands_per_user
    nc = tu * c                      # candidate rows in this tile
    t = hist_ref.shape[0] // tu      # history length
    hdim = w1_ref.shape[1]
    edim = w2_ref.shape[1]

    # ---- layer 1: bf16 HBM operands straight into the MXU, f32 accumulate --
    # Two dots against the same resident w1 (no concatenated-activation copy).
    h_cand = jnp.maximum(
        jnp.dot(cand_ref[...], w1_ref[...],
                preferred_element_type=jnp.float32) + b1_ref[...], 0.0)   # (tu*C, H)
    h_hist = jnp.maximum(
        jnp.dot(hist_ref[...], w1_ref[...],
                preferred_element_type=jnp.float32) + b1_ref[...], 0.0)   # (tu*T, H)

    # ---- mean-pool history hidden states BEFORE layer 2 --------------------
    # (mean over T commutes with the affine second layer -> identical to
    #  mean-pooling the per-item embeddings, at 1/T of the layer-2 FLOPs)
    pooled = jnp.mean(h_hist.reshape(tu, t, hdim), axis=1)                # (tu, H)

    # ---- layer 2 ------------------------------------------------------------
    cand_emb = jnp.dot(h_cand.astype(jnp.bfloat16), w2_ref[...],
                       preferred_element_type=jnp.float32) + b2_ref[...]  # (tu*C, E)
    user_emb = jnp.dot(pooled.astype(jnp.bfloat16), w2_ref[...],
                       preferred_element_type=jnp.float32) + b2_ref[...]  # (tu, E)

    # ---- score: -||user - cand||_2 (matches -torch.norm(..., p=2, dim=1)) --
    diff = cand_emb.reshape(tu, c, edim) - user_emb[:, None, :]           # (tu, C, E)
    dsq = (diff * diff).reshape(nc, edim)                                 # (tu*C, E)
    # Transpose (XLU) + sublane-axis sum: exact f32 reduction whose result is
    # already a lane-dense (1, tu*C) row -> full-width output stores instead
    # of C-wide masked stores.
    ssum = jnp.sum(dsq.T, axis=0, keepdims=True)                          # (1, tu*C)
    # TODO(synk): at production C/E sizes, switch to ||u||^2 + ||c||^2 - 2*u@c.T
    # so the cross term runs on the otherwise-idle MXU.
    out_ref[...] = (-jnp.sqrt(ssum)).reshape(1, 1, nc)


# ----------------------------------------------------------------------------
# Model wrapper
# ----------------------------------------------------------------------------
def news_recommendation_forward(candidates, histories, n_candidates_per_user,
                                params, *, training=False, tile_users=16,
                                vmem_limit_bytes=48 * 1024 * 1024):
    """candidates: (U*C, F) f32; histories: (U, T, F) f32 -> (U*C,) scores."""
    if training:
        # TODO(synk): training branch returns (user_embeddings, per-user candidate
        # embeddings); needs an embeddings-output kernel variant. Eval path only.
        raise NotImplementedError("training branch not implemented in Pallas port")

    u, t, f = histories.shape
    c = int(n_candidates_per_user[0])
    # TODO(synk): ragged n_candidates_per_user (true torch .split semantics)
    # would need a scalar-prefetch offset table; constant counts assumed here.
    assert all(int(n) == c for n in n_candidates_per_user)
    assert candidates.shape == (u * c, f)

    tile_users = min(tile_users, u)
    assert u % tile_users == 0, "user count must be divisible by tile_users"
    # Demo-shape constraints (tile-aligned reshapes + lane-dense output).
    # TODO(synk): general C/T (not multiples of 8) need padded tiles.
    assert c % 8 == 0 and t % 8 == 0
    assert (tile_users * c) % 128 == 0, "pick tile_users so tile_users*C is a multiple of 128"

    w1, b1, w2, b2 = params
    hdim, edim = w1.shape[1], w2.shape[1]

    # bf16 activations + weights in HBM (halves input DMA bytes; MXU operands
    # are bf16 either way so matmul numerics are unchanged). Biases stay f32.
    cand_bf = candidates.astype(jnp.bfloat16)
    hist_bf = histories.reshape(u * t, f).astype(jnp.bfloat16)
    w1_bf, w2_bf = w1.astype(jnp.bfloat16), w2.astype(jnp.bfloat16)

    num_tiles = u // tile_users
    kernel = functools.partial(fused_news_rec_kernel,
                               tile_users=tile_users, cands_per_user=c)

    scores = pl.pallas_call(
        kernel,
        out_shape=jax.ShapeDtypeStruct((num_tiles, 1, tile_users * c), jnp.float32),
        grid_spec=pltpu.PrefetchScalarGridSpec(
            num_scalar_prefetch=0,
            grid=(num_tiles,),
            in_specs=[
                pl.BlockSpec((tile_users * c, f), lambda i: (i, 0)),   # candidates tile (bf16)
                pl.BlockSpec((tile_users * t, f), lambda i: (i, 0)),   # history tile (bf16)
                pl.BlockSpec((f, hdim), lambda i: (0, 0)),             # resident w1
                pl.BlockSpec((1, hdim), lambda i: (0, 0)),             # resident b1
                pl.BlockSpec((hdim, edim), lambda i: (0, 0)),          # resident w2
                pl.BlockSpec((1, edim), lambda i: (0, 0)),             # resident b2
            ],
            # lane-dense output: one (1, tile_users*C) row per grid step
            out_specs=pl.BlockSpec((1, 1, tile_users * c), lambda i: (i, 0, 0)),
        ),
        compiler_params=pltpu.CompilerParams(
            dimension_semantics=("parallel",),   # shard user tiles across TCs (v7x)
            vmem_limit_bytes=vmem_limit_bytes,   # 48 MiB: safe on v7x's 64 MiB VMEM
        ),
    )(cand_bf, hist_bf, w1_bf, b1, w2_bf, b2)

    # torch.hstack([...]).flatten(): user-major, candidate-minor ordering.
    return scores.reshape(-1)


# ----------------------------------------------------------------------------
# Deterministic setup + run + check
# ----------------------------------------------------------------------------
if __name__ == "__main__":
    key = jax.random.PRNGKey(0)
    kx, kh, k1, k2, k3, k4 = jax.random.split(key, 6)

    # Small but (8,128)-aligned shapes; 4 grid steps of 16 users each so the
    # output rows are 128 lanes wide and both v7x TensorCores get work.
    n_users = 64
    cands_per_user = 8
    hist_len = 8
    feat_dim = 128
    hidden_dim = 128
    emb_dim = 128
    tile_users = 16   # production: sweep 64-512 under per-generation VMEM caps

    n_candidates_per_user = [cands_per_user] * n_users
    n_total = n_users * cands_per_user

    candidates = jax.random.normal(kx, (n_total, feat_dim), dtype=jnp.float32)
    histories = jax.random.normal(kh, (n_users, hist_len, feat_dim),
                                  dtype=jnp.float32)

    # deterministic synthetic news-encoder parameters
    w1 = jax.random.normal(k1, (feat_dim, hidden_dim), dtype=jnp.float32) * 0.1
    b1 = jax.random.normal(k2, (1, hidden_dim), dtype=jnp.float32) * 0.01
    w2 = jax.random.normal(k3, (hidden_dim, emb_dim), dtype=jnp.float32) * 0.1
    b2 = jax.random.normal(k4, (1, emb_dim), dtype=jnp.float32) * 0.01
    params = (w1, b1, w2, b2)

    scores = news_recommendation_forward(candidates, histories,
                                         n_candidates_per_user, params,
                                         tile_users=tile_users)
    scores = jax.block_until_ready(scores)
    assert scores.shape == (n_total,)

    # --- reference 1: same bf16-operand math as the kernel (tight tolerance) --
    cand_bf = candidates.astype(jnp.bfloat16)
    hist_bf = histories.reshape(-1, feat_dim).astype(jnp.bfloat16)
    w1_bf, w2_bf = w1.astype(jnp.bfloat16), w2.astype(jnp.bfloat16)

    def layer1(x_bf):
        return jnp.maximum(
            jnp.dot(x_bf, w1_bf, preferred_element_type=jnp.float32) + b1, 0.0)

    def layer2(h):
        return jnp.dot(h.astype(jnp.bfloat16), w2_bf,
                       preferred_element_type=jnp.float32) + b2

    cand_emb = layer2(layer1(cand_bf))
    pooled = jnp.mean(layer1(hist_bf).reshape(n_users, hist_len, hidden_dim),
                      axis=1)
    user_emb = layer2(pooled)
    d = cand_emb.reshape(n_users, cands_per_user, emb_dim) - user_emb[:, None, :]
    ref_bf16 = (-jnp.sqrt(jnp.sum(d * d, axis=-1))).reshape(-1)
    assert jnp.allclose(scores, ref_bf16, atol=2e-3, rtol=2e-3)

    # --- reference 2: original un-fused f32 module semantics (encode every
    # history item, mean-pool the *embeddings*) -> must agree up to bf16 error,
    # validating that pooling-before-layer-2 preserves the module's math. ------
    def enc_f32(x):
        return jnp.maximum(x @ w1 + b1, 0.0) @ w2 + b2

    ce = enc_f32(candidates)
    ue = jnp.mean(enc_f32(histories.reshape(-1, feat_dim))
                  .reshape(n_users, hist_len, emb_dim), axis=1)
    d32 = ce.reshape(n_users, cands_per_user, emb_dim) - ue[:, None, :]
    ref_f32 = (-jnp.sqrt(jnp.sum(d32 * d32, axis=-1))).reshape(-1)
    assert jnp.allclose(scores, ref_f32, atol=5e-2, rtol=5e-2)

    print("KERNEL_OK")
</pallas_src>

<mosaic_0001>
module attributes {stable_mosaic.version = 11 : i64} {
  func.func @fused_news_rec_kernel(%arg0: i32, %arg1: memref<128x128xbf16, #tpu.memory_space<vmem>>, %arg2: memref<128x128xbf16, #tpu.memory_space<vmem>>, %arg3: memref<128x128xbf16, #tpu.memory_space<vmem>>, %arg4: memref<1x128xf32, #tpu.memory_space<vmem>>, %arg5: memref<128x128xbf16, #tpu.memory_space<vmem>>, %arg6: memref<1x128xf32, #tpu.memory_space<vmem>>, %arg7: memref<1x1x128xf32, #tpu.memory_space<vmem>>) attributes {dimension_semantics = [#tpu.dimension_semantics<parallel>], iteration_bounds = array<i64: 4>, scalar_prefetch = 0 : i64, scratch_operands = 0 : i64, tpu.core_type = #tpu.core_type<tc>, window_params = [{transform_indices = @transform_0, window_bounds = array<i64: 128, 128>}, {transform_indices = @transform_1, window_bounds = array<i64: 128, 128>}, {pipeline_mode = #tpu.pipeline_mode<synchronous>, transform_indices = @transform_2, window_bounds = array<i64: 128, 128>}, {pipeline_mode = #tpu.pipeline_mode<synchronous>, transform_indices = @transform_3, window_bounds = array<i64: 1, 128>}, {pipeline_mode = #tpu.pipeline_mode<synchronous>, transform_indices = @transform_4, window_bounds = array<i64: 128, 128>}, {pipeline_mode = #tpu.pipeline_mode<synchronous>, transform_indices = @transform_5, window_bounds = array<i64: 1, 128>}, {transform_indices = @transform_6, window_bounds = array<i64: 1, 1, 128>}]} {
    %c0 = arith.constant 0 : index
    %c0_0 = arith.constant 0 : index
    %0 = vector.load %arg1[%c0, %c0_0] : memref<128x128xbf16, #tpu.memory_space<vmem>>, vector<128x128xbf16>
    %c0_1 = arith.constant 0 : index
    %c0_2 = arith.constant 0 : index
    %1 = vector.load %arg3[%c0_1, %c0_2] : memref<128x128xbf16, #tpu.memory_space<vmem>>, vector<128x128xbf16>
    %cst = arith.constant dense<0.000000e+00> : vector<128x128xf32>
    %2 = tpu.matmul %0, %1, %cst {dimension_numbers = #tpu.dot_dimension_numbers<[1], [0], [0], [1], [0, 0, 1, 1], [], []>} : vector<128x128xbf16>, vector<128x128xbf16>, vector<128x128xf32> -> vector<128x128xf32>
    %c0_3 = arith.constant 0 : index
    %c0_4 = arith.constant 0 : index
    %3 = vector.load %arg4[%c0_3, %c0_4] : memref<1x128xf32, #tpu.memory_space<vmem>>, vector<1x128xf32>
    %4 = vector.broadcast %3 : vector<1x128xf32> to vector<128x128xf32>
    %5 = arith.addf %2, %4 : vector<128x128xf32>
    %cst_5 = arith.constant 0.000000e+00 : f32
    %6 = vector.broadcast %cst_5 : f32 to vector<128x128xf32>
    %7 = arith.maximumf %5, %6 : vector<128x128xf32>
    %c0_6 = arith.constant 0 : index
    %c0_7 = arith.constant 0 : index
    %8 = vector.load %arg2[%c0_6, %c0_7] : memref<128x128xbf16, #tpu.memory_space<vmem>>, vector<128x128xbf16>
    %c0_8 = arith.constant 0 : index
    %c0_9 = arith.constant 0 : index
    %9 = vector.load %arg3[%c0_8, %c0_9] : memref<128x128xbf16, #tpu.memory_space<vmem>>, vector<128x128xbf16>
    %cst_10 = arith.constant dense<0.000000e+00> : vector<128x128xf32>
    %10 = tpu.matmul %8, %9, %cst_10 {dimension_numbers = #tpu.dot_dimension_numbers<[1], [0], [0], [1], [0, 0, 1, 1], [], []>} : vector<128x128xbf16>, vector<128x128xbf16>, vector<128x128xf32> -> vector<128x128xf32>
    %c0_11 = arith.constant 0 : index
    %c0_12 = arith.constant 0 : index
    %11 = vector.load %arg4[%c0_11, %c0_12] : memref<1x128xf32, #tpu.memory_space<vmem>>, vector<1x128xf32>
    %12 = vector.broadcast %11 : vector<1x128xf32> to vector<128x128xf32>
    %13 = arith.addf %10, %12 : vector<128x128xf32>
    %cst_13 = arith.constant 0.000000e+00 : f32
    %14 = vector.broadcast %cst_13 : f32 to vector<128x128xf32>
    %15 = arith.maximumf %13, %14 : vector<128x128xf32>
    %16 = vector.shape_cast %15 : vector<128x128xf32> to vector<16x8x128xf32>
    %cst_14 = arith.constant dense<0.000000e+00> : vector<16x128xf32>
    %17 = vector.multi_reduction <add>, %16, %cst_14 [1] : vector<16x8x128xf32> to vector<16x128xf32>
    %cst_15 = arith.constant 8.000000e+00 : f32
    %18 = vector.broadcast %cst_15 : f32 to vector<16x128xf32>
    %19 = arith.divf %17, %18 : vector<16x128xf32>
    %20 = arith.truncf %7 : vector<128x128xf32> to vector<128x128xbf16>
    %c0_16 = arith.constant 0 : index
    %c0_17 = arith.constant 0 : index
    %21 = vector.load %arg5[%c0_16, %c0_17] : memref<128x128xbf16, #tpu.memory_space<vmem>>, vector<128x128xbf16>
    %cst_18 = arith.constant dense<0.000000e+00> : vector<128x128xf32>
    %22 = tpu.matmul %20, %21, %cst_18 {dimension_numbers = #tpu.dot_dimension_numbers<[1], [0], [0], [1], [0, 0, 1, 1], [], []>} : vector<128x128xbf16>, vector<128x128xbf16>, vector<128x128xf32> -> vector<128x128xf32>
    %c0_19 = arith.constant 0 : index
    %c0_20 = arith.constant 0 : index
    %23 = vector.load %arg6[%c0_19, %c0_20] : memref<1x128xf32, #tpu.memory_space<vmem>>, vector<1x128xf32>
    %24 = vector.broadcast %23 : vector<1x128xf32> to vector<128x128xf32>
    %25 = arith.addf %22, %24 : vector<128x128xf32>
    %26 = arith.truncf %19 : vector<16x128xf32> to vector<16x128xbf16>
    %c0_21 = arith.constant 0 : index
    %c0_22 = arith.constant 0 : index
    %27 = vector.load %arg5[%c0_21, %c0_22] : memref<128x128xbf16, #tpu.memory_space<vmem>>, vector<128x128xbf16>
    %cst_23 = arith.constant dense<0.000000e+00> : vector<16x128xf32>
    %28 = tpu.matmul %26, %27, %cst_23 {dimension_numbers = #tpu.dot_dimension_numbers<[1], [0], [0], [1], [0, 0, 1, 1], [], []>} : vector<16x128xbf16>, vector<128x128xbf16>, vector<16x128xf32> -> vector<16x128xf32>
    %c0_24 = arith.constant 0 : index
    %c0_25 = arith.constant 0 : index
    %29 = vector.load %arg6[%c0_24, %c0_25] : memref<1x128xf32, #tpu.memory_space<vmem>>, vector<1x128xf32>
    %30 = vector.broadcast %29 : vector<1x128xf32> to vector<16x128xf32>
    %31 = arith.addf %28, %30 : vector<16x128xf32>
    %32 = vector.shape_cast %25 : vector<128x128xf32> to vector<16x8x128xf32>
    %33 = vector.shape_cast %31 : vector<16x128xf32> to vector<16x1x128xf32>
    %34 = vector.broadcast %33 : vector<16x1x128xf32> to vector<16x8x128xf32>
    %35 = arith.subf %32, %34 : vector<16x8x128xf32>
    %36 = arith.mulf %35, %35 : vector<16x8x128xf32>
    %37 = vector.shape_cast %36 : vector<16x8x128xf32> to vector<128x128xf32>
    %38 = tpu.transpose %37, [1, 0] : vector<128x128xf32> -> vector<128x128xf32>
    %cst_26 = arith.constant dense<0.000000e+00> : vector<128xf32>
    %39 = vector.multi_reduction <add>, %38, %cst_26 [0] : vector<128x128xf32> to vector<128xf32>
    %40 = vector.shape_cast %39 : vector<128xf32> to vector<1x128xf32>
    %41 = math.sqrt %40 : vector<1x128xf32>
    %cst_27 = arith.constant 0.000000e+00 : f32
    %42 = vector.broadcast %cst_27 : f32 to vector<1x128xf32>
    %43 = arith.subf %42, %41 : vector<1x128xf32>
    %44 = vector.shape_cast %43 : vector<1x128xf32> to vector<1x1x128xf32>
    %c0_28 = arith.constant 0 : index
    %c0_29 = arith.constant 0 : index
    %c0_30 = arith.constant 0 : index
    %45 = vector.load %arg7[%c0_28, %c0_29, %c0_30] : memref<1x1x128xf32, #tpu.memory_space<vmem>>, vector<1x1x128xf32>
    tpu.vector_store %arg7[%c0_28, %c0_29, %c0_30], %44 {strides = array<i32>} : memref<1x1x128xf32, #tpu.memory_space<vmem>>, vector<1x1x128xf32>,
    return
  }
  func.func @transform_0(%arg0: i32) -> (i32, i32) {
    %c0_i32 = arith.constant 0 : i32
    %c0_i32_0 = arith.constant 0 : i32
    return %arg0, %c0_i32 : i32, i32
  }
  func.func @transform_1(%arg0: i32) -> (i32, i32) {
    %c0_i32 = arith.constant 0 : i32
    %c0_i32_0 = arith.constant 0 : i32
    return %arg0, %c0_i32 : i32, i32
  }
  func.func @transform_2(%arg0: i32) -> (i32, i32) {
    %c0_i32 = arith.constant 0 : i32
    %c0_i32_0 = arith.constant 0 : i32
    %c0_i32_1 = arith.constant 0 : i32
    return %c0_i32, %c0_i32_0 : i32, i32
  }
  func.func @transform_3(%arg0: i32) -> (i32, i32) {
    %c0_i32 = arith.constant 0 : i32
    %c0_i32_0 = arith.constant 0 : i32
    %c0_i32_1 = arith.constant 0 : i32
    return %c0_i32, %c0_i32_0 : i32, i32
  }
  func.func @transform_4(%arg0: i32) -> (i32, i32) {
    %c0_i32 = arith.constant 0 : i32
    %c0_i32_0 = arith.constant 0 : i32
    %c0_i32_1 = arith.constant 0 : i32
    return %c0_i32, %c0_i32_0 : i32, i32
  }
  func.func @transform_5(%arg0: i32) -> (i32, i32) {
    %c0_i32 = arith.constant 0 : i32
    %c0_i32_0 = arith.constant 0 : i32
    %c0_i32_1 = arith.constant 0 : i32
    return %c0_i32, %c0_i32_0 : i32, i32
  }
  func.func @transform_6(%arg0: i32) -> (i32, i32, i32) {
    %c0_i32 = arith.constant 0 : i32
    %c0_i32_0 = arith.constant 0 : i32
    %c0_i32_1 = arith.constant 0 : i32
    return %arg0, %c0_i32, %c0_i32_0 : i32, i32, i32
  }
}

</mosaic_0001>

<bundles_post_ra>
// kernel: tpu_custom_call.1
= control target key start
LH: loop header
LB: loop body
LE: loop exit
PB: predicated region body
PF: predicated region fallthrough
CT: control target
= control target key end

     0   :  { %s2595_s0 = inlined_call_operand.hbm [shape: bf16[512,128], index: 0, kind: input, shape index: {}]   ;;  %s2596_s1 = inlined_call_operand.hbm [shape: bf16[512,128], index: 1, kind: input, shape index: {}]   ;;  %s2597_s2 = inlined_call_operand.hbm [shape: bf16[128,128], index: 2, kind: input, shape index: {}]   ;;  %s2598_s3 = inlined_call_operand.vmem [shape: f32[1,128], index: 3, kind: input, shape index: {}]   ;;  %s2599_s4 = inlined_call_operand.hbm [shape: bf16[128,128], index: 4, kind: input, shape index: {}]   ;;  %s2600_s5 = inlined_call_operand.vmem [shape: f32[1,128], index: 5, kind: input, shape index: {}]   ;;  %s2601_s6 = inlined_call_operand.hbm [shape: f32[4,1,128], index: 6, kind: output, shape index: {}]  }
   0x1   :  { %2609 = sst [smem:[#allocation16_spill]] %s2595_s0 }
   0x2   :  { %2610 = sst [smem:[#allocation17_spill]] %s2597_s2 }
   0x3   :  { %2611 = sst [smem:[#allocation18_spill]] %s2599_s4 }
   0x4   :  { %11 = vsyncpa [#allocation3], 0 }
   0x5   :  { %13 = vsyncpa [#allocation3 + $0x1], 0 }
   0x6   :  { %14 = vsyncpa [#allocation6], 0 }
   0x7   :  { %16 = vsyncpa [#allocation6 + $0x1], 0 }
   0x8   :  { %17 = vsyncpa [#allocation9], 0 }
   0x9   :  { %18 = vsyncpa [#allocation4], 0 }
   0xa   :  { %20 = vsyncpa [#allocation4 + $0x1], 0  ;;  %s2142_s21 = smov 0   ;;  %s2144_s22 = smov 0  }
   0xb   :  { %s2146_s23 = smov 0   ;;  %s2148_s24 = smov 0  }
   0xc LB: > { %s2163_s25 = sadd.s32 4294967295, %s2095_s24   ;;  %s1562_s26 = sadd.s32 4294967294, %s2095_s24   ;;  %s2095_s24 = sphi %s2148_s24, %s2634_s24   ;;  %s2091_s23 = sphi %s2146_s23, %s2633_s23   ;;  %s2087_s22 = sphi %s2144_s22, %s2632_s22   ;;  %s2083_s21 = sphi %s2142_s21, %s2631_s21  }
   0xd   : > { %p46_p0 = scmp.ne.s32.totalorder %s2087_s22, %s2083_s21  ;;  %p2602_p1 = scmp.eq.s32.totalorder %s2163_s25, 0 }
   0xe   : > { %p186_p3 = scmp.eq.s32.totalorder %s1562_s26, 3  ;;  %p1563_p5 = scmp.ge.s32.totalorder %s2095_s24, 1 }
   0xf   : > { %p2172_p4 = por %p2602_p1, %p46_p0  ;;  %p193_p7 = scmp.lt.s32.totalorder %s2095_s24, 5 }
  0x10   : > { %p2177_p6 = por %p186_p3, %p46_p0  ;;  %s2097_s30 = smov [#allocation7]  }
  0x11   : > { %s2612_s27 = scalar_select %p2172_p4, 1, 0 }
  0x12   : > { %s2613_s28 = scalar_select %p2177_p6, 1, 0 }
  0x13   : > { %p2182_p8 = pnand %p1563_p5, %p193_p7  ;;  %s205_s7 = sshll.u32 %s2097_s30, 4  ;;  %s206_s7 = int_to_ptr.vmem [resolvable:$true] %s205_s7 }
  0x14   : > { %s2098_s9 = smov [#allocation8]   ;;  %s2616_s2 = sld [smem:[#allocation17_spill]] }
  0x15   : > { %s2614_s29 = scalar_select %p2182_p8, 1, 0 }
  0x16   : > { %p1804_p9 = pneg %p2182_p8  ;;  %s221_s10 = sshll.u32 %s2098_s9, 4  ;;  %s2194_s10 = int_to_ptr.vmem [resolvable:$true] %s221_s10 }
  0x18   : > { %p2190_p10 = pnand %p1804_p9, %p2602_p1 }
  0x1a   : > { %s1901_s13 = scalar_lea.hbm %s2616_s2, 1024  ;;  %p1903_p12 = pneg %p2190_p10 }
  0x1b   : > { %p1902_p11 = scmp.ne.s32.totalorder %s2616_s2, %s1901_s13  ;;  %p1908_p3 = scmp.lt.u32.totalorder %s1901_s13, %s2616_s2 }
  0x1d   : > { %p1904_p13 = pnand %p1903_p12, %p1902_p11 }
  0x1f   : > { %p1905_p0 = pneg %p1904_p13 }
  0x21   : > { %p1910_p5 = pnand %p1908_p3, %p1905_p0 }
  0x23   : > { %1913 = shalt.err (!%p1910_p5)
}
  0x24   : > { %s1914_s18 = scalar_lea.vmem %s206_s7, 1024  ;;  %p1922_p2 = scmp.lt.s32.totalorder %s206_s7, %s206_s7 }
  0x25   : > { %p1915_p7 = scmp.ne.s32.totalorder %s206_s7, %s1914_s18  ;;  %p1923_p6 = scmp.lt.s32.totalorder %s1914_s18, %s1914_s18 }
  0x27   : > { %p1917_p9 = pnand %p1915_p7, %p1903_p12  ;;  %p1924_p4 = por %p1923_p6, %p1922_p2 }
  0x29   : > { %p1918_p1 = pneg %p1917_p9 }
  0x2b   : > { %p1925_p8 = pnand %p1924_p4, %p1918_p1 }
  0x2d   : > { %1928 = shalt.err (!%p1925_p8)
}
  0x2e   : > { %s2605_s19 = smov 64   ;;  %s2607_s20 = smov 4  }
  0x2f   : > { %1807 = dma.hbm_to_vmem [thread:$0]  (!%p2190_p10), %s2616_s2, 1024, %s206_s7, [#allocation6], %s2605_s19, %s2605_s19, %s2607_s20  }
  0x30   : > { %s2617_s4 = sld [smem:[#allocation18_spill]] }
  0x36   : > { %s1929_s12 = scalar_lea.hbm %s2617_s4, 1024 }
  0x37   : > { %p1930_p1 = scmp.ne.s32.totalorder %s2617_s4, %s1929_s12  ;;  %p1936_p6 = scmp.lt.u32.totalorder %s1929_s12, %s2617_s4 }
  0x39   : > { %p1932_p2 = pnand %p1930_p1, %p1903_p12 }
  0x3b   : > { %p1933_p4 = pneg %p1932_p2 }
  0x3d   : > { %p1938_p8 = pnand %p1936_p6, %p1933_p4 }
  0x3f   : > { %1941 = shalt.err (!%p1938_p8)
}
  0x40   : > { %s1942_s7 = scalar_lea.vmem %s2194_s10, 1024  ;;  %p1950_p3 = scmp.lt.s32.totalorder %s2194_s10, %s2194_s10 }
  0x41   : > { %p1943_p11 = scmp.ne.s32.totalorder %s2194_s10, %s1942_s7  ;;  %p1951_p5 = scmp.lt.s32.totalorder %s1942_s7, %s1942_s7 }
  0x43   : > { %p1945_p13 = pnand %p1943_p11, %p1903_p12  ;;  %p1952_p7 = por %p1951_p5, %p1950_p3 }
  0x45   : > { %p1946_p0 = pneg %p1945_p13 }
  0x47   : > { %p1953_p9 = pnand %p1952_p7, %p1946_p0 }
  0x49   : > { %1956 = shalt.err (!%p1953_p9)
}
  0x4a   : > { %1810 = dma.hbm_to_vmem [thread:$0]  (!%p2190_p10), %s2617_s4, 1024, %s2194_s10, [#allocation9], %s2605_s19, %s2605_s19, %s2607_s20  }
  0x4b   : > { %s2250_s8 = sadd.s32 1, %s2095_s24   ;;  %s33_s26 = sadd.s32 1, %s2091_s23 }
  0x4c   : > { %s30_s30 = ssub.s32 %s2095_s24, %s2250_s8  ;;  %p40_p12 = scmp.ne.s32.totalorder %s2091_s23, %s2087_s22 }
  0x4d   : > { %p31_p1 = scmp.eq.s32.totalorder %s30_s30, 0  ;;  %p41_p2 = scmp.eq.s32.totalorder %s2095_s24, 0 }
  0x4e   : > { %p2618_p4 = scmp.eq.s32.totalorder %s2163_s25, 3  ;;  %p1824_p8 = scmp.lt.s32.totalorder %s2095_s24, 4 }
  0x4f   : > { %s2266_s11 = scalar_select %p31_p1, %s2091_s23, %s33_s26  }
  0x50   : > { %p2260_p6 = por %p2618_p4, %p40_p12  ;;  %p42_p11 = por %p41_p2, %p40_p12 }
  0x51   : > { %s238_s12 = sand.u32 1, %s2091_s23   ;;  %s1615_s10 = sshll.u32 %s2095_s24, 10 }
  0x52   : > { %s1567_s13 = sshll.u32 %s238_s12, 6  ;;  %s2620_s0 = sld [smem:[#allocation16_spill]] }
  0x53   : > { %s242_s7 = scalar_lea.vmem [#allocation2], %s1567_s13  ;;  %p2277_p10 = pnand %p1824_p8, %p42_p11 }
  0x54   : > { %s249_s17 = sshll.u32 %s242_s7, 4  ;;  %s2284_s14 = scalar_lea.hbm %s2596_s1, %s1615_s10  ;;  %s2275_s17 = int_to_ptr.vmem [resolvable:$true] %s249_s17 }
  0x55   : > { %s263_s15 = scalar_lea.vmem [#allocation5], %s1567_s13  ;;  %s2288_s20 = scalar_lea.sflag [#allocation3], %s238_s12 }
  0x56   : > { %s2286_s19 = sshll.u32 %s263_s15, 4  ;;  %p1959_p0 = pneg %p2277_p10  ;;  %s2320_s19 = int_to_ptr.vmem [resolvable:$true] %s2286_s19 }
  0x58   : > { %s2273_s16 = scalar_lea.hbm %s2620_s0, %s1615_s10  ;;  %s1962_s26 = scalar_lea.hbm %s2620_s0, 4096 }
  0x59   : > { %s1957_s7 = scalar_lea.hbm %s2273_s16, 1024  ;;  %p1963_p7 = scmp.lt.u32.totalorder %s2273_s16, %s2620_s0 }
  0x5a   : > { %p1958_p13 = scmp.ne.s32.totalorder %s2273_s16, %s1957_s7  ;;  %p1964_p9 = scmp.lt.u32.totalorder %s1962_s26, %s1957_s7 }
  0x5b   : > { %p1966_p1 = scmp.lt.u32.totalorder %s1957_s7, %s2273_s16 }
  0x5c   : > { %p1960_p3 = pnand %p1959_p0, %p1958_p13  ;;  %p1965_p12 = por %p1964_p9, %p1963_p7 }
  0x5e   : > { %p1961_p5 = pneg %p1960_p3  ;;  %p1967_p2 = por %p1966_p1, %p1965_p12 }
  0x60   : > { %p1968_p4 = pnand %p1967_p2, %p1961_p5 }
  0x62   : > { %1971 = shalt.err (!%p1968_p4)
}
  0x63   : > { %s1972_s12 = scalar_lea.vmem %s2275_s17, 1024  ;;  %s2101_s2 = smov [#allocation2]  }
  0x64   : > { %p1973_p8 = scmp.ne.s32.totalorder %s2275_s17, %s1972_s12  ;;  %s1977_s4 = sshll.u32 %s2101_s2, 4  ;;  %s1978_s4 = int_to_ptr.vmem [resolvable:$false] %s1977_s4 }
  0x65   : > { %s1979_s13 = scalar_lea.vmem %s1978_s4, 2048  ;;  %p1980_p3 = scmp.lt.s32.totalorder %s2275_s17, %s1978_s4 }
  0x66   : > { %p1975_p11 = pnand %p1973_p8, %p1959_p0  ;;  %p1981_p7 = scmp.lt.s32.totalorder %s1979_s13, %s1972_s12 }
  0x68   : > { %p1976_p13 = pneg %p1975_p11  ;;  %p1982_p9 = por %p1981_p7, %p1980_p3 }
  0x6a   : > { %p1983_p12 = pnand %p1982_p9, %p1976_p13 }
  0x6c   : > { %1986 = shalt.err (!%p1983_p12)
}
  0x6d   : > { %s2622_s15 = smov 4   ;;  %s2623_s7 = smov 64  }
  0x6e   : > { %1814 = dma.hbm_to_vmem [thread:$0]  (!%p2277_p10), %s2273_s16, 1024, %s2275_s17, %s2288_s20, %s2623_s7, %s2623_s7, %s2622_s15  }
  0x6f   : > { %s259_s26 = sand.u32 1, %s2095_s24   ;;  %s1987_s10 = scalar_lea.hbm %s2284_s14, 1024 }
  0x70   : > { %s2323_s30 = scalar_lea.sflag [#allocation6], %s259_s26  ;;  %p1988_p5 = scmp.ne.s32.totalorder %s2284_s14, %s1987_s10 }
  0x71   : > { %s1992_s4 = scalar_lea.hbm %s2596_s1, 4096  ;;  %p1993_p4 = scmp.lt.u32.totalorder %s2284_s14, %s2596_s1 }
  0x72   : > { %p1990_p1 = pnand %p1988_p5, %p1959_p0  ;;  %p1994_p8 = scmp.lt.u32.totalorder %s1992_s4, %s1987_s10 }
  0x73   : > { %p1996_p13 = scmp.lt.u32.totalorder %s1987_s10, %s2284_s14 }
  0x74   : > { %p1991_p2 = pneg %p1990_p1  ;;  %p1995_p11 = por %p1994_p8, %p1993_p4 }
  0x76   : > { %p1997_p3 = por %p1996_p13, %p1995_p11 }
  0x78   : > { %p1998_p7 = pnand %p1997_p3, %p1991_p2 }
  0x7a   : > { %2001 = shalt.err (!%p1998_p7)
}
  0x7b   : > { %s2002_s20 = scalar_lea.vmem %s2320_s19, 1024  ;;  %s2102_s16 = smov [#allocation5]  }
  0x7c   : > { %p2003_p9 = scmp.ne.s32.totalorder %s2320_s19, %s2002_s20  ;;  %s2007_s17 = sshll.u32 %s2102_s16, 4  ;;  %s2008_s17 = int_to_ptr.vmem [resolvable:$false] %s2007_s17 }
  0x7d   : > { %s2009_s0 = scalar_lea.vmem %s2008_s17, 2048  ;;  %p2010_p1 = scmp.lt.s32.totalorder %s2320_s19, %s2008_s17 }
  0x7e   : > { %p2005_p12 = pnand %p2003_p9, %p1959_p0  ;;  %p2011_p4 = scmp.lt.s32.totalorder %s2009_s0, %s2002_s20 }
  0x80   : > { %p2006_p5 = pneg %p2005_p12  ;;  %p2012_p8 = por %p2011_p4, %p2010_p1 }
  0x82   : > { %p2013_p11 = pnand %p2012_p8, %p2006_p5 }
  0x84   : > { %2016 = shalt.err (!%p2013_p11)
}
  0x85   : > { %1817 = dma.hbm_to_vmem [thread:$0]  (!%p2277_p10), %s2284_s14, 1024, %s2320_s19, %s2323_s30, %s2623_s7, %s2623_s7, %s2622_s15  }
  0x86   : > { %p2624_p0 = scmp.ne.s32.totalorder %s2614_s29, 0 }
  0x87   : > { %s2355_s26 = sand.u32 (!%p2624_p0), 1, %s2087_s22   ;;  %p2625_p2 = scmp.ne.s32.totalorder (!%p2624_p0), %s2612_s27, 0 }
  0x88   : > { %282 = sbr.rel (%p2624_p0) target bundleno = 919 (0x397), region = 44  ;;  %s1574_s10 = sshll.u32 (!%p2624_p0), %s2355_s26, 6 }
  0x89   : > { %s285_s12 = scalar_lea.sflag (!%p2624_p0), [#allocation3], %s2355_s26  ;;  %s2359_s2 = scalar_lea.vmem (!%p2624_p0), [#allocation2], %s1574_s10 }
  0x8f   : > { %2062 = dma.done.wait (%p2625_p2), %s285_s12, 1024  }
  0x90   : > { %2064 = vsyncadd (%p2625_p2), %s285_s12, 4294966272  ;;  %s293_s19 = sand.u32 1, %s2163_s25   ;;  %s2366_s18 = scalar_lea.vmem [#allocation5], %s1574_s10 }
  0x91   : > { %s294_s29 = scalar_lea.sflag [#allocation6], %s293_s19 }
  0x92   : > { %2066 = dma.done.wait (%p2625_p2), %s294_s29, 1024  }
  0x93   : > { %2068 = vsyncadd (%p2625_p2), %s294_s29, 4294966272  ;;  %p2626_p10 = scmp.eq.s32.totalorder %s2163_s25, 0 }
  0x95   : > { %2070 = dma.done.wait (%p2626_p10), [#allocation6], 1024   ;;  %p2627_p13 = pmov %p2626_p10 }
  0x96   : > { %p2628_p3 = pmov %p2626_p10 }
  0x97   : > { %2072 = vsyncadd (%p2627_p13), [#allocation6], 4294966272 }
  0x98   : > { %2074 = dma.done.wait (%p2628_p3), [#allocation9], 1024   ;;  %p2629_p7 = pmov %p2628_p3 }
  0x99   : > { %v1867_v0 = vld [vmem:[#allocation7] sm:$0xff]   ;;  %v1868_v1 = vld [vmem:[#allocation7 + $0x8] sm:$0xff]   ;;  %v1869_v2 = vld [vmem:[#allocation7 + $0x10] sm:$0xff]   ;;  %v2103_v29 = vmov 0.0   ;;  %vm2104_vm0 = vmmov 0   ;;  %vm1103_vm1 = vcmask 1041409  }
  0x9a   : > { %2076 = vsyncadd (%p2629_p7), [#allocation9], 4294966272  ;;  %1706 = vmatprep.subr.bf16.mxu1 %v1867_v0  ;;  %1674 = vmatprep.subr.bf16.mxu0 %v1867_v0  ;;  %v1870_v3 = vld [vmem:[#allocation7 + $0x18] sm:$0xff]   ;;  %v1875_v4 = vld [vmem:[%s2366_s18] sm:$0xff]   ;;  %vm1105_vm2 = vcmask 1042434   ;;  %vm1107_vm3 = vcmask 1043459  }
  0x9b   : > { %1707 = vmatpush3.bf16.msra.mxu1 %v1867_v0  ;;  %1675 = vmatpush3.bf16.msra.mxu0 %v1867_v0  ;;  %v1871_v5 = vld [vmem:[#allocation7 + $0x20] sm:$0xff]   ;;  %v1872_v6 = vld [vmem:[#allocation7 + $0x28] sm:$0xff]   ;;  %v1873_v8 = vld [vmem:[#allocation7 + $0x30] sm:$0xff]   ;;  %vm1109_vm4 = vcmask 1044484   ;;  %vm1111_vm5 = vcmask 1045509   ;;  %vm1113_vm6 = vcmask 1046534  }
  0x9c   : > { %1708 = vmatprep.subr.bf16.mxu1 %v1868_v1  ;;  %1676 = vmatprep.subr.bf16.mxu0 %v1868_v1  ;;  %v1883_v7 = vld [vmem:[%s2359_s2] sm:$0xff]   ;;  %v1874_v9 = vld [vmem:[#allocation7 + $0x38] sm:$0xff]   ;;  %v1876_v10 = vld [vmem:[%s2366_s18 + $0x8] sm:$0xff]   ;;  %vm1115_vm7 = vcmask 1047559   ;;  %s1612_s30 = sshll.u32 %s2163_s25, 4  ;;  %s337_s4 = scalar_lea.vmem [#allocation10], %s2355_s26 }
  0x9d   : > { %1722 = vmatprep.mubr.bf16.mxu1 %v1875_v4  ;;  %1690 = vmatprep.mubr.bf16.mxu0 %v1883_v7  ;;  %v1884_v11 = vld [vmem:[%s2359_s2 + $0x8] sm:$0xff]   ;;  %v1877_v12 = vld [vmem:[%s2366_s18 + $0x10] sm:$0xff]   ;;  %v1878_v14 = vld [vmem:[%s2366_s18 + $0x18] sm:$0xff]   ;;  %s1454_s13 = sshll.u32 %s337_s4, 4  ;;  %s2552_s17 = scalar_lea.hbm %s2601_s6, %s1612_s30  ;;  %s2554_s13 = int_to_ptr.vmem [resolvable:$true] %s1454_s13 }
  0x9e   : > { %v1885_v13 = vld [vmem:[%s2359_s2 + $0x10] sm:$0xff]   ;;  %v1886_v15 = vld [vmem:[%s2359_s2 + $0x18] sm:$0xff]   ;;  %v1879_v16 = vld [vmem:[%s2366_s18 + $0x20] sm:$0xff]   ;;  %s1442_s0 = scalar_lea.sflag [#allocation4], %s2355_s26  ;;  %s2017_s10 = scalar_lea.vmem %s2554_s13, 16 }
  0x9f   : > { %1709 = vmatpush3.bf16.msra.mxu1 %v1868_v1  ;;  %1677 = vmatpush3.bf16.msra.mxu0 %v1868_v1  ;;  %v1887_v17 = vld [vmem:[%s2359_s2 + $0x20] sm:$0xff]   ;;  %v1880_v18 = vld [vmem:[%s2366_s18 + $0x28] sm:$0xff]   ;;  %v1881_v20 = vld [vmem:[%s2366_s18 + $0x30] sm:$0xff]   ;;  %p2018_p9 = scmp.ne.s32.totalorder %s2554_s13, %s2017_s10  ;;  %s2106_s25 = smov [#allocation10]  }
  0xa0   : > { %1710 = vmatprep.subr.bf16.mxu1 %v1869_v2  ;;  %1678 = vmatprep.subr.bf16.mxu0 %v1869_v2  ;;  %v1888_v19 = vld [vmem:[%s2359_s2 + $0x28] sm:$0xff]   ;;  %v1889_v21 = vld [vmem:[%s2359_s2 + $0x30] sm:$0xff]   ;;  %v1882_v22 = vld [vmem:[%s2366_s18 + $0x38] sm:$0xff]   ;;  %s2021_s12 = sshll.u32 %s2106_s25, 4  ;;  %s2022_s12 = int_to_ptr.vmem [resolvable:$false] %s2021_s12 }
  0xa1   : > { %v1890_v23 = vld [vmem:[%s2359_s2 + $0x38] sm:$0xff]   ;;  %v1891_v24 = vld [vmem:[#allocation8] sm:$0xff]   ;;  %v1892_v25 = vld [vmem:[#allocation8 + $0x8] sm:$0xff]   ;;  %p2019_p12 = pnand %p2018_p9, %p2260_p6  ;;  %s2023_s2 = scalar_lea.vmem %s2022_s12, 32 }
  0xa2   : > { %v1893_v26 = vld [vmem:[#allocation8 + $0x10] sm:$0xff]   ;;  %v1894_v27 = vld [vmem:[#allocation8 + $0x18] sm:$0xff]   ;;  %v1895_v28 = vld [vmem:[#allocation8 + $0x20] sm:$0xff]   ;;  %p2024_p1 = scmp.lt.s32.totalorder %s2554_s13, %s2022_s12  ;;  %p2025_p4 = scmp.lt.s32.totalorder %s2023_s2, %s2017_s10 }
  0xa3   : > { %1711 = vmatpush3.bf16.msra.mxu1 %v1869_v2  ;;  %1679 = vmatpush3.bf16.msra.mxu0 %v1869_v2  ;;  %v1896_v30 = vld [vmem:[#allocation8 + $0x28] sm:$0xff]   ;;  %v1897_v31 = vld [vmem:[#allocation8 + $0x30] sm:$0xff]   ;;  %v1898_v32 = vld [vmem:[#allocation8 + $0x38] sm:$0xff]   ;;  %p2020_p5 = pneg %p2019_p12 }
  0xa4   : > { %1712 = vmatprep.subr.bf16.mxu1 %v1870_v3  ;;  %1680 = vmatprep.subr.bf16.mxu0 %v1870_v3  ;;  %v2399_v33 = vld [vmem:[%s2598_s3] ss:$0 sm:$0xff]  ;;  %p2026_p8 = por %p2025_p4, %p2024_p1 }
  0xa6   : > { %p2027_p11 = pnand %p2026_p8, %p2020_p5 }
  0xa7   : > { %1713 = vmatpush3.bf16.msra.mxu1 %v1870_v3  ;;  %1681 = vmatpush3.bf16.msra.mxu0 %v1870_v3 }
  0xa8   : > { %1714 = vmatprep.subr.bf16.mxu1 %v1871_v5  ;;  %1682 = vmatprep.subr.bf16.mxu0 %v1871_v5 }
  0xab   : > { %1715 = vmatpush3.bf16.msra.mxu1 %v1871_v5  ;;  %1683 = vmatpush3.bf16.msra.mxu0 %v1871_v5 }
  0xac   : > { %1716 = vmatprep.subr.bf16.mxu1 %v1872_v6  ;;  %1684 = vmatprep.subr.bf16.mxu0 %v1872_v6 }
  0xaf   : > { %1717 = vmatpush3.bf16.msra.mxu1 %v1872_v6  ;;  %1685 = vmatpush3.bf16.msra.mxu0 %v1872_v6 }
  0xb0   : > { %1718 = vmatprep.subr.bf16.mxu1 %v1873_v8  ;;  %1686 = vmatprep.subr.bf16.mxu0 %v1873_v8 }
  0xb3   : > { %1719 = vmatpush3.bf16.msra.mxu1 %v1873_v8  ;;  %1687 = vmatpush3.bf16.msra.mxu0 %v1873_v8 }
  0xb4   : > { %1720 = vmatprep.subr.bf16.mxu1 %v1874_v9  ;;  %1688 = vmatprep.subr.bf16.mxu0 %v1874_v9 }
  0xb7   : > { %1721 = vmatpush3.bf16.msra.mxu1 %v1874_v9  ;;  %1689 = vmatpush3.bf16.msra.mxu0 %v1874_v9 }
  0xb8   : > { %1738 = vmatprep.subr.bf16.mxu0 %v1891_v24  ;;  %1770 = vmatprep.subr.bf16.mxu1 %v2103_v29 }
  0xba   : > { %1723 = vmatmul.mubr.bf16.vlgmr.msra.gmra.mrb[0].mxu1 %v1876_v10  ;;  %1691 = vmatmul.mubr.bf16.vlgmr.msra.gmra.mrb[0].mxu0 %v1884_v11 }
  0xbb   : > { %1726 = vmatprep.mubr.bf16.mxu1 %v1877_v12  ;;  %1694 = vmatprep.mubr.bf16.mxu0 %v1885_v13 }
  0xbc   : > { %1739 = vmatpush3.bf16.msra.mxu0 %v1891_v24  ;;  %1771 = vmatpush3.bf16.msra.mxu1 %v1891_v24 }
  0xbd   : > { %1740 = vmatprep.subr.bf16.mxu0 %v1892_v25  ;;  %1772 = vmatprep.subr.bf16.mxu1 %v2103_v29 }
  0xc0   : > { %1741 = vmatpush3.bf16.msra.mxu0 %v1892_v25  ;;  %1773 = vmatpush3.bf16.msra.mxu1 %v1892_v25 }
  0xc1   : > { %1742 = vmatprep.subr.bf16.mxu0 %v1893_v26  ;;  %1774 = vmatprep.subr.bf16.mxu1 %v2103_v29 }
  0xc2   : > { %1727 = vmatmul.mubr.bf16.gmra.mrb[4].mxu1 %v1878_v14  ;;  %1695 = vmatmul.mubr.bf16.gmra.mrb[4].mxu0 %v1886_v15 }
  0xc3   : > { %1730 = vmatprep.mubr.bf16.mxu1 %v1879_v16  ;;  %1698 = vmatprep.mubr.bf16.mxu0 %v1887_v17 }
  0xc4   : > { %1743 = vmatpush3.bf16.msra.mxu0 %v1893_v26  ;;  %1775 = vmatpush3.bf16.msra.mxu1 %v1893_v26 }
  0xc5   : > { %1744 = vmatprep.subr.bf16.mxu0 %v1894_v27  ;;  %1776 = vmatprep.subr.bf16.mxu1 %v2103_v29 }
  0xc8   : > { %1745 = vmatpush3.bf16.msra.mxu0 %v1894_v27  ;;  %1777 = vmatpush3.bf16.msra.mxu1 %v1894_v27 }
  0xc9   : > { %1746 = vmatprep.subr.bf16.mxu0 %v1895_v28  ;;  %1778 = vmatprep.subr.bf16.mxu1 %v2103_v29 }
  0xca   : > { %1731 = vmatmul.mubr.bf16.gmra.mrb[8].mxu1 %v1880_v18  ;;  %1699 = vmatmul.mubr.bf16.gmra.mrb[8].mxu0 %v1888_v19 }
  0xcb   : > { %1734 = vmatprep.mubr.bf16.mxu1 %v1881_v20  ;;  %1702 = vmatprep.mubr.bf16.mxu0 %v1889_v21 }
  0xcc   : > { %1747 = vmatpush3.bf16.msra.mxu0 %v1895_v28  ;;  %1779 = vmatpush3.bf16.msra.mxu1 %v1895_v28 }
  0xcd   : > { %1748 = vmatprep.subr.bf16.mxu0 %v1896_v30  ;;  %1780 = vmatprep.subr.bf16.mxu1 %v2103_v29 }
  0xd0   : > { %1749 = vmatpush3.bf16.msra.mxu0 %v1896_v30  ;;  %1781 = vmatpush3.bf16.msra.mxu1 %v1896_v30 }
  0xd1   : > { %1750 = vmatprep.subr.bf16.mxu0 %v1897_v31  ;;  %1782 = vmatprep.subr.bf16.mxu1 %v2103_v29 }
  0xd2   : > { %1735 = vmatmul.mubr.bf16.gmra.mrb[12].mxu1 %v1882_v22  ;;  %1703 = vmatmul.mubr.bf16.gmra.mrb[12].mxu0 %v1890_v23 }
  0xd3   : > { %1786 = vmatprep.mubr.msk.bf16.mxu1 %vm2104_vm0, %v2103_v29 }
  0xd4   : > { %1751 = vmatpush3.bf16.msra.mxu0 %v1897_v31  ;;  %1783 = vmatpush3.bf16.msra.mxu1 %v1897_v31 }
  0xd5   : > { %1752 = vmatprep.subr.bf16.mxu0 %v1898_v32  ;;  %1784 = vmatprep.subr.bf16.mxu1 %v2103_v29 }
  0xd8   : > { %1753 = vmatpush3.bf16.msra.mxu0 %v1898_v32  ;;  %1785 = vmatpush3.bf16.msra.mxu1 %v1898_v32 }
 0x18d   : > { %v1724_v34 = vpop.f32.mrb[0].mxu1  ;;  %v1692_v35 = vpop.f32.mrb[0].mxu0 }
 0x18e   : > { %v696_v36 = vadd.f32 %v1724_v34, %v2399_v33  ;;  %v687_v37 = vpop.f32.mrb[1].mxu1  ;;  %v519_v38 = vadd.f32 %v1692_v35, %v2399_v33  ;;  %v510_v39 = vpop.f32.mrb[1].mxu0 }
 0x18f   : > { %v688_v40 = vadd.f32 %v2399_v33, %v687_v37  ;;  %v1725_v41 = vpop.f32.mrb[2].mxu1  ;;  %v511_v42 = vadd.f32 %v2399_v33, %v510_v39  ;;  %v1693_v43 = vpop.f32.mrb[2].mxu0 }
 0x190   : > { %v752_v44 = vmax.f32 %v696_v36, 0.0  ;;  %v699_v45 = vadd.f32 %v1725_v41, %v2399_v33  ;;  %v690_v46 = vpop.f32.mrb[3].mxu1  ;;  %v575_v47 = vmax.f32 %v519_v38, 0.0  ;;  %v522_v48 = vadd.f32 %v1693_v43, %v2399_v33  ;;  %v513_v49 = vpop.f32.mrb[3].mxu0 }
 0x191   : > { %v750_v50 = vmax.f32 %v688_v40, 0.0  ;;  %v691_v51 = vadd.f32 %v2399_v33, %v690_v46  ;;  %v573_v52 = vmax.f32 %v511_v42, 0.0  ;;  %v514_v53 = vadd.f32 %v2399_v33, %v513_v49 }
 0x192   : > { %v778_v54 = vrot.slane %v752_v44, 4  ;;  %v753_v55 = vmax.f32 %v699_v45, 0.0  ;;  %v576_v56 = vmax.f32 %v522_v48, 0.0 }
 0x193   : > { %v766_v57 = vrot.slane %v750_v50, 4  ;;  %v751_v58 = vmax.f32 %v691_v51, 0.0  ;;  %v574_v59 = vmax.f32 %v514_v53, 0.0 }
 0x194   : > { %v779_v60 = vadd.f32 %v778_v54, %v752_v44  ;;  %v784_v61 = vrot.slane %v753_v55, 4  ;;  %v880_v62 = vpack.c.bf16 %v576_v56, %v575_v47 }
 0x195   : > { %v767_v63 = vadd.f32 %v766_v57, %v750_v50  ;;  %v772_v0 = vrot.slane %v751_v58, 4  ;;  %v1728_v1 = vpop.f32.mrb[4].mxu1  ;;  %v879_v2 = vpack.c.bf16 %v574_v59, %v573_v52  ;;  %v1696_v3 = vpop.f32.mrb[4].mxu0 }
 0x196   : > { %v780_v4 = vrot.slane %v779_v60, 2  ;;  %v785_v5 = vadd.f32 %v784_v61, %v753_v55  ;;  %v712_v6 = vadd.f32 %v1728_v1, %v2399_v33  ;;  %v703_v7 = vpop.f32.mrb[5].mxu1  ;;  %v2411_v8 = vadd.f32 %v1696_v3, %v2399_v33  ;;  %v526_v9 = vpop.f32.mrb[5].mxu0 }
 0x197   : > { %v768_v10 = vrot.slane %v767_v63, 2  ;;  %v773_v11 = vadd.f32 %v772_v0, %v751_v58  ;;  %v704_v12 = vadd.f32 %v2399_v33, %v703_v7  ;;  %v1729_v13 = vpop.f32.mrb[6].mxu1  ;;  %v2415_v14 = vadd.f32 %v2399_v33, %v526_v9  ;;  %v2417_v15 = vpop.f32.mrb[6].mxu0  ;;  %1754 = vmatprep.mubr.bf16.mxu0 %v879_v2 }
 0x198   : > { %v781_v16 = vadd.f32 %v780_v4, %v779_v60  ;;  %v786_v17 = vrot.slane %v785_v5, 2  ;;  %v756_v18 = vmax.f32 %v712_v6, 0.0  ;;  %v715_v19 = vadd.f32 %v1729_v13, %v2399_v33  ;;  %v706_v20 = vpop.f32.mrb[7].mxu1  ;;  %v2420_v21 = vpop.f32.mrb[7].mxu0  ;;  %1755 = vmatmul.mubr.bf16.vlgmr.msra.gmra.mrb[16].mxu0 %v880_v62 }
 0x199   : > { %v769_v22 = vadd.f32 %v768_v10, %v767_v63  ;;  %v774_v23 = vrot.slane %v773_v11, 2  ;;  %v754_v24 = vmax.f32 %v704_v12, 0.0  ;;  %v707_v25 = vadd.f32 %v2399_v33, %v706_v20 }
 0x19a   : > { %v782_v26 = vrot.slane %v781_v16, 1  ;;  %v787_v27 = vadd.f32 %v786_v17, %v785_v5  ;;  %v802_v28 = vrot.slane %v756_v18, 4  ;;  %v757_v29 = vmax.f32 %v715_v19, 0.0 }
 0x19b   : > { %v770_v30 = vrot.slane %v769_v22, 1  ;;  %v775_v31 = vadd.f32 %v774_v23, %v773_v11  ;;  %v790_v32 = vrot.slane %v754_v24, 4  ;;  %v755_v34 = vmax.f32 %v707_v25, 0.0 }
 0x19c   : > { %v783_v35 = vadd.f32 %v782_v26, %v781_v16  ;;  %v788_v36 = vrot.slane %v787_v27, 1  ;;  %v803_v37 = vadd.f32 %v802_v28, %v756_v18  ;;  %v808_v38 = vrot.slane %v757_v29, 4 }
 0x19d   : > { %v771_v39 = vadd.f32 %v770_v30, %v769_v22  ;;  %v776_v40 = vrot.slane %v775_v31, 1  ;;  %v791_v41 = vadd.f32 %v790_v32, %v754_v24  ;;  %v796_v42 = vrot.slane %v755_v34, 4  ;;  %v1732_v43 = vpop.f32.mrb[8].mxu1  ;;  %v2423_v44 = vpop.f32.mrb[8].mxu0 }
 0x19e   : > { %v865_v45 = vmul.f32 0.125, %v783_v35  ;;  %v789_v46 = vadd.f32 %v788_v36, %v787_v27  ;;  %v804_v47 = vrot.slane %v803_v37, 2  ;;  %v809_v48 = vadd.f32 %v808_v38, %v757_v29  ;;  %v719_v49 = vpop.f32.mrb[9].mxu1  ;;  %v2425_v50 = vpop.f32.mrb[9].mxu0 }
 0x19f   : > { %v863_v51 = vmul.f32 0.125, %v771_v39  ;;  %v777_v52 = vadd.f32 %v776_v40, %v775_v31  ;;  %v792_v53 = vrot.slane %v791_v41, 2  ;;  %v797_v54 = vadd.f32 %v796_v42, %v755_v34  ;;  %v1733_v55 = vpop.f32.mrb[10].mxu1  ;;  %v2427_v56 = vpop.f32.mrb[10].mxu0 }
 0x1a0   : > { %v1057_v57 = vpack.c.bf16 %v865_v45, %v865_v45  ;;  %v866_v58 = vmul.f32 0.125, %v789_v46  ;;  %v805_v59 = vadd.f32 %v804_v47, %v803_v37  ;;  %v810_v60 = vrot.slane %v809_v48, 2  ;;  %v722_v61 = vpop.f32.mrb[11].mxu1  ;;  %v2429_v62 = vpop.f32.mrb[11].mxu0 }
 0x1a1   : > { %v1055_v63 = vpack.c.bf16 %v863_v51, %v863_v51  ;;  %v864_v0 = vmul.f32 0.125, %v777_v52  ;;  %v793_v1 = vadd.f32 %v792_v53, %v791_v41  ;;  %v798_v2 = vrot.slane %v797_v54, 2 }
 0x1a2   : > { %v1089_v3 = vunpack.c.l.b16 %v1057_v57  ;;  %v1058_v4 = vpack.c.bf16 %v866_v58, %v866_v58  ;;  %v806_v5 = vrot.slane %v805_v59, 1  ;;  %v811_v6 = vadd.f32 %v810_v60, %v809_v48 }
 0x1a3   : > { %v1087_v7 = vunpack.c.l.b16 %v1055_v63  ;;  %v1056_v9 = vpack.c.bf16 %v864_v0, %v864_v0  ;;  %v794_v10 = vrot.slane %v793_v1, 1  ;;  %v799_v11 = vadd.f32 %v798_v2, %v797_v54 }
 0x1a4   : > { %v1090_v12 = vunpack.c.l.b16 %v1058_v4  ;;  %v807_v13 = vadd.f32 %v806_v5, %v805_v59  ;;  %v812_v16 = vrot.slane %v811_v6, 1  ;;  %v728_v17 = vadd.f32 %v1732_v43, %v2399_v33 }
 0x1a5   : > { %v1088_v18 = vunpack.c.l.b16 %v1056_v9  ;;  %v795_v19 = vadd.f32 %v794_v10, %v793_v1  ;;  %v800_v20 = vrot.slane %v799_v11, 1  ;;  %v720_v22 = vadd.f32 %v2399_v33, %v719_v49  ;;  %v1736_v23 = vpop.f32.mrb[12].mxu1  ;;  %v2433_v24 = vpop.f32.mrb[12].mxu0 }
 0x1a6   : > { %v869_v25 = vmul.f32 0.125, %v807_v13  ;;  %v813_v26 = vadd.f32 %v812_v16, %v811_v6  ;;  %v760_v27 = vmax.f32 %v728_v17, 0.0  ;;  %v731_v28 = vadd.f32 %v1733_v55, %v2399_v33  ;;  %v735_v29 = vpop.f32.mrb[13].mxu1  ;;  %v2436_v30 = vpop.f32.mrb[13].mxu0 }
 0x1a7   : > { %v1104_v31 = vsel %vm1103_vm1, %v1088_v18, %v1087_v7  ;;  %v867_v32 = vmul.f32 0.125, %v795_v19  ;;  %v801_v34 = vadd.f32 %v800_v20, %v799_v11  ;;  %v758_v35 = vmax.f32 %v720_v22, 0.0  ;;  %v1737_v36 = vpop.f32.mrb[14].mxu1  ;;  %v2439_v37 = vpop.f32.mrb[14].mxu0 }
 0x1a8   : > { %v1106_v38 = vsel %vm1105_vm2, %v1089_v3, %v1104_v31  ;;  %v1061_v39 = vpack.c.bf16 %v869_v25, %v869_v25  ;;  %v870_v40 = vmul.f32 0.125, %v813_v26  ;;  %v826_v41 = vrot.slane %v760_v27, 4  ;;  %v738_v42 = vpop.f32.mrb[15].mxu1  ;;  %v2442_v43 = vpop.f32.mrb[15].mxu0 }
 0x1a9   : > { %v1059_v45 = vpack.c.bf16 %v867_v32, %v867_v32  ;;  %v1108_v46 = vsel %vm1107_vm3, %v1090_v12, %v1106_v38  ;;  %v868_v47 = vmul.f32 0.125, %v801_v34  ;;  %v814_v48 = vrot.slane %v758_v35, 4 }
 0x1aa   : > { %v2445_v49 = vunpack.c.l.b16 %v1061_v39  ;;  %v1062_v51 = vpack.c.bf16 %v870_v40, %v870_v40  ;;  %v827_v52 = vadd.f32 %v826_v41, %v760_v27  ;;  %v761_v53 = vmax.f32 %v731_v28, 0.0 }
 0x1ab   : > { %v1091_v54 = vunpack.c.l.b16 %v1059_v45  ;;  %v1060_v55 = vpack.c.bf16 %v868_v47, %v868_v47  ;;  %v815_v57 = vadd.f32 %v814_v48, %v758_v35  ;;  %v723_v58 = vadd.f32 %v2399_v33, %v722_v61 }
 0x1ac   : > { %v2448_v59 = vunpack.c.l.b16 %v1062_v51  ;;  %v828_v60 = vrot.slane %v827_v52, 2  ;;  %v832_v63 = vrot.slane %v761_v53, 4  ;;  %v744_v0 = vadd.f32 %v1736_v23, %v2399_v33 }
 0x1ad   : > { %v1110_v1 = vsel %vm1109_vm4, %v1091_v54, %v1108_v46  ;;  %v1092_v2 = vunpack.c.l.b16 %v1060_v55  ;;  %v816_v3 = vrot.slane %v815_v57, 2  ;;  %v759_v4 = vmax.f32 %v723_v58, 0.0 }
 0x1ae   : > { %v829_v5 = vadd.f32 %v828_v60, %v827_v52  ;;  %v833_v6 = vadd.f32 %v832_v63, %v761_v53  ;;  %v764_v7 = vmax.f32 %v744_v0, 0.0  ;;  %v736_v9 = vadd.f32 %v2399_v33, %v735_v29 }
 0x1af   : > { %v2454_v10 = vsel %vm1111_vm5, %v1092_v2, %v1110_v1  ;;  %v817_v61 = vadd.f32 %v816_v3, %v815_v57  ;;  %v820_v11 = vrot.slane %v759_v4, 4  ;;  %v747_v12 = vadd.f32 %v1737_v36, %v2399_v33 }
 0x1b0   : > { %v830_v13 = vrot.slane %v829_v5, 1  ;;  %v834_v16 = vrot.slane %v833_v6, 2  ;;  %v850_v17 = vrot.slane %v764_v7, 4  ;;  %v762_v18 = vmax.f32 %v736_v9, 0.0 }
 0x1b1   : > { %v818_v19 = vrot.slane %v817_v61, 1  ;;  %v821_v20 = vadd.f32 %v820_v11, %v759_v4  ;;  %v765_v22 = vmax.f32 %v747_v12, 0.0  ;;  %v739_v23 = vadd.f32 %v2399_v33, %v738_v42 }
 0x1b2   : > { %v831_v25 = vadd.f32 %v830_v13, %v829_v5  ;;  %v835_v26 = vadd.f32 %v834_v16, %v833_v6  ;;  %v851_v27 = vadd.f32 %v850_v17, %v764_v7  ;;  %v838_v28 = vrot.slane %v762_v18, 4 }
 0x1b3   : > { %v819_v29 = vadd.f32 %v818_v19, %v817_v61  ;;  %v822_v31 = vrot.slane %v821_v20, 2  ;;  %v856_v32 = vrot.slane %v765_v22, 4  ;;  %v763_v34 = vmax.f32 %v739_v23, 0.0 }
 0x1b4   : > { %v873_v35 = vmul.f32 0.125, %v831_v25  ;;  %v836_v38 = vrot.slane %v835_v26, 1  ;;  %v852_v36 = vrot.slane %v851_v27, 2  ;;  %v839_v39 = vadd.f32 %v838_v28, %v762_v18 }
 0x1b5   : > { %v871_v40 = vmul.f32 0.125, %v819_v29  ;;  %v823_v41 = vadd.f32 %v822_v31, %v821_v20  ;;  %v857_v45 = vadd.f32 %v856_v32, %v765_v22  ;;  %v844_v46 = vrot.slane %v763_v34, 4 }
 0x1b6   : > { %v1065_v47 = vpack.c.bf16 %v873_v35, %v873_v35  ;;  %v837_v48 = vadd.f32 %v836_v38, %v835_v26  ;;  %v853_v51 = vadd.f32 %v852_v36, %v851_v27  ;;  %v840_v42 = vrot.slane %v839_v39, 2 }
 0x1b7   : > { %v1063_v52 = vpack.c.bf16 %v871_v40, %v871_v40  ;;  %v824_v53 = vrot.slane %v823_v41, 1  ;;  %v858_v54 = vrot.slane %v857_v45, 2  ;;  %v845_v55 = vadd.f32 %v844_v46, %v763_v34 }
 0x1b8   : > { %v1097_v57 = vunpack.c.l.b16 %v1065_v47  ;;  %v874_v58 = vmul.f32 0.125, %v837_v48  ;;  %v854_v60 = vrot.slane %v853_v51, 1  ;;  %v841_v63 = vadd.f32 %v840_v42, %v839_v39 }
 0x1b9   : > { %v1095_v0 = vunpack.c.l.b16 %v1063_v52  ;;  %v825_v1 = vadd.f32 %v824_v53, %v823_v41  ;;  %v859_v2 = vadd.f32 %v858_v54, %v857_v45  ;;  %v846_v3 = vrot.slane %v845_v55, 2 }
 0x1ba   : > { %v1066_v4 = vpack.c.bf16 %v874_v58, %v874_v58  ;;  %v855_v5 = vadd.f32 %v854_v60, %v853_v51  ;;  %v842_v6 = vrot.slane %v841_v63, 1  ;;  %v579_v7 = vmax.f32 %v2411_v8, 0.0 }
 0x1bb   : > { %v872_v9 = vmul.f32 0.125, %v825_v1  ;;  %v860_v61 = vrot.slane %v859_v2, 1  ;;  %v847_v11 = vadd.f32 %v846_v3, %v845_v55  ;;  %v577_v12 = vmax.f32 %v2415_v14, 0.0 }
 0x1bc   : > { %v1098_v13 = vunpack.c.l.b16 %v1066_v4  ;;  %v877_v16 = vmul.f32 0.125, %v855_v5  ;;  %v843_v17 = vadd.f32 %v842_v6, %v841_v63  ;;  %v538_v18 = vadd.f32 %v2417_v15, %v2399_v33 }
 0x1bd   : > { %v1064_v19 = vpack.c.bf16 %v872_v9, %v872_v9  ;;  %v861_v20 = vadd.f32 %v860_v61, %v859_v2  ;;  %v848_v22 = vrot.slane %v847_v11, 1  ;;  %v530_v23 = vadd.f32 %v2399_v33, %v2420_v21 }
 0x1be   : > { %v1069_v8 = vpack.c.bf16 %v877_v16, %v877_v16  ;;  %v875_v25 = vmul.f32 0.125, %v843_v17  ;;  %v580_v26 = vmax.f32 %v538_v18, 0.0  ;;  %v551_v14 = vadd.f32 %v2423_v44, %v2399_v33 }
 0x1bf   : > { %v1096_v27 = vunpack.c.l.b16 %v1064_v19  ;;  %v878_v28 = vmul.f32 0.125, %v861_v20  ;;  %v849_v29 = vadd.f32 %v848_v22, %v847_v11  ;;  %v578_v31 = vmax.f32 %v530_v23, 0.0  ;;  %v2495_v19 = vld [vmem:[%s2600_s5] ss:$0 sm:$0xff] }
 0x1c0   : > { %v1101_v32 = vunpack.c.l.b16 %v1069_v8  ;;  %v1067_v34 = vpack.c.bf16 %v875_v25, %v875_v25  ;;  %v882_v15 = vpack.c.bf16 %v580_v26, %v579_v7  ;;  %v583_v35 = vmax.f32 %v551_v14, 0.0 }
 0x1c1   : > { %v1117_v38 = vsel %vm1103_vm1, %v1096_v27, %v1095_v0  ;;  %v1070_v36 = vpack.c.bf16 %v878_v28, %v878_v28  ;;  %v876_v39 = vmul.f32 0.125, %v849_v29  ;;  %v881_v21 = vpack.c.bf16 %v578_v31, %v577_v12 }
 0x1c2   : > { %v1118_v40 = vsel %vm1105_vm2, %v1097_v57, %v1117_v38  ;;  %v1099_v41 = vunpack.c.l.b16 %v1067_v34  ;;  %v543_v45 = vadd.f32 %v2399_v33, %v2425_v50  ;;  %v554_v44 = vadd.f32 %v2427_v56, %v2399_v33 }
 0x1c3   : > { %v1119_v46 = vsel %vm1107_vm3, %v1098_v13, %v1118_v40  ;;  %v1102_v47 = vunpack.c.l.b16 %v1070_v36  ;;  %v1068_v48 = vpack.c.bf16 %v876_v39, %v876_v39  ;;  %1758 = vmatprep.mubr.bf16.mxu0 %v881_v21  ;;  %v546_v51 = vadd.f32 %v2399_v33, %v2429_v62 }
 0x1c4   : > { %v1120_v42 = vsel %vm1109_vm4, %v1099_v41, %v1119_v46  ;;  %v581_v52 = vmax.f32 %v543_v45, 0.0  ;;  %v584_v53 = vmax.f32 %v554_v44, 0.0  ;;  %1759 = vmatmul.mubr.bf16.gmra.mrb[20].mxu0 %v882_v15  ;;  %v567_v54 = vadd.f32 %v2433_v24, %v2399_v33 }
 0x1c5   : > { %v1100_v50 = vunpack.c.l.b16 %v1068_v48  ;;  %v582_v55 = vmax.f32 %v546_v51, 0.0  ;;  %v559_v56 = vadd.f32 %v2399_v33, %v2436_v30  ;;  %v570_v57 = vadd.f32 %v2439_v37, %v2399_v33 }
 0x1c6   : > { %v884_v58 = vpack.c.bf16 %v584_v53, %v583_v35  ;;  %v587_v60 = vmax.f32 %v567_v54, 0.0  ;;  %v1114_v62 = vsel %vm1113_vm6, %v2445_v49, %v2454_v10  ;;  %v562_v63 = vadd.f32 %v2399_v33, %v2442_v43 }
 0x1c7   : > { %v1121_v0 = vsel %vm1111_vm5, %v1100_v50, %v1120_v42  ;;  %v883_v24 = vpack.c.bf16 %v582_v55, %v581_v52  ;;  %v585_v1 = vmax.f32 %v559_v56, 0.0  ;;  %v588_v2 = vmax.f32 %v570_v57, 0.0 }
 0x1c8   : > { %v1116_v30 = vsel %vm1115_vm7, %v2448_v59, %v1114_v62  ;;  %v1122_v3 = vsel %vm1113_vm6, %v1101_v32, %v1121_v0  ;;  %v586_v37 = vmax.f32 %v562_v63, 0.0  ;;  %v2105_v9 = vmov 1966171168  }
 0x1c9   : > { %v886_v4 = vpack.c.bf16 %v588_v2, %v587_v60  ;;  %1762 = vmatprep.mubr.bf16.mxu0 %v883_v24  ;;  %v1123_v5 = vsel %vm1115_vm7, %v1102_v47, %v1122_v3  ;;  %v1171_v61 = vunpack.c.l.s4 %v2105_v9  ;;  %v1173_v59 = vlaneseq }
 0x1ca   : > { %v1124_v6 = vpack.c.b16 %v1123_v5, %v1116_v30  ;;  %v885_v49 = vpack.c.bf16 %v586_v37, %v585_v1 }
 0x1cb   : > { %v1172_v16 = vunpack.c.0.s8 %v1171_v61  ;;  %v1174_v17 = vshrl.u32 %v1173_v59, 7 }
 0x1cc   : > { %1787 = vmatmul.mubr.bf16.vlgmr.msra.gmra.mrb[16].mxu1 %v1124_v6  ;;  %1763 = vmatmul.mubr.bf16.gmra.mrb[24].mxu0 %v884_v58 }
 0x1cd   : > { %1766 = vmatprep.mubr.bf16.mxu0 %v885_v49  ;;  %v2497_v20 = vsub.s32 %v1172_v16, %v1174_v17  ;;  %v2505_v36 = vsub.s32 0, %v1174_v17 }
 0x1d4   : > { %1767 = vmatmul.mubr.bf16.gmra.mrb[28].mxu0 %v886_v4 }
 0x26b   : > { %v1756_v33 = vpop.f32.mrb[16].mxu0 }
 0x26c   : > { %v992_v43 = vpop.f32.mrb[17].mxu0  ;;  %v1001_v15 = vadd.f32 %v1756_v33, %v2495_v19 }
 0x26d   : > { %v1757_v10 = vpop.f32.mrb[18].mxu0  ;;  %v993_v35 = vadd.f32 %v2495_v19, %v992_v43 }
 0x26e   : > { %v995_v7 = vpop.f32.mrb[19].mxu0  ;;  %v1004_v38 = vadd.f32 %v1757_v10, %v2495_v19 }
 0x26f   : > { %v996_v45 = vadd.f32 %v2495_v19, %v995_v7 }
 0x297   : > { %v1760_v11 = vpop.f32.mrb[20].mxu0 }
 0x298   : > { %v1008_v12 = vpop.f32.mrb[21].mxu0  ;;  %v1017_v44 = vadd.f32 %v1760_v11, %v2495_v19 }
 0x299   : > { %v1761_v13 = vpop.f32.mrb[22].mxu0  ;;  %v1009_v46 = vadd.f32 %v2495_v19, %v1008_v12 }
 0x29a   : > { %v1011_v18 = vpop.f32.mrb[23].mxu0  ;;  %v1020_v52 = vadd.f32 %v1761_v13, %v2495_v19 }
 0x29b   : > { %v1012_v58 = vadd.f32 %v2495_v19, %v1011_v18 }
 0x29f   : > { %v1160_v22 = vpop.f32.mrb[16].mxu1  ;;  %v1764_v23 = vpop.f32.mrb[24].mxu0 }
 0x2a0   : > { %v1161_v8 = vadd.f32 %v2495_v19, %v1160_v22  ;;  %v1788_v25 = vpop.f32.mrb[17].mxu1  ;;  %v1024_v26 = vpop.f32.mrb[25].mxu0  ;;  %v1033_v11 = vadd.f32 %v1764_v23, %v2495_v19 }
 0x2a1   : > { %v1163_v14 = vpop.f32.mrb[18].mxu1  ;;  %v1765_v27 = vpop.f32.mrb[26].mxu0  ;;  %v1025_v60 = vadd.f32 %v2495_v19, %v1024_v26 }
 0x2a2   : > { %v1169_v28 = vcombine.high %v1161_v8, %v1161_v8  ;;  %v1176_v29 = vrot.slane %v1161_v8, %v2497_v20  ;;  %v1164_v31 = vadd.f32 %v2495_v19, %v1163_v14  ;;  %v1789_v32 = vpop.f32.mrb[19].mxu1  ;;  %v1027_v34 = vpop.f32.mrb[27].mxu0  ;;  %v1036_v12 = vadd.f32 %v1765_v27, %v2495_v19 }
 0x2a3   : > { %v1028_v17 = vadd.f32 %v2495_v19, %v1027_v34 }
 0x2a4   : > { %v1183_v39 = vrot.slane %v1169_v28, %v2497_v20  ;;  %v1184_v21 = vcombine.high %v1176_v29, %v1176_v29  ;;  %v1218_v40 = vcombine.high %v1164_v31, %v1164_v31  ;;  %v1225_v41 = vrot.slane %v1164_v31, %v2497_v20 }
 0x2a5   : > { %v1192_v47 = vrot.slane %v1176_v29, %v2497_v20 }
 0x2a6   : > { %v1185_v48 = vcombine.high %v1183_v39, %v1183_v39  ;;  %v1232_v51 = vrot.slane %v1218_v40, %v2497_v20  ;;  %v1241_v42 = vrot.slane %v1225_v41, %v2497_v20  ;;  %v1206_v50 = vrot.slane %v1184_v21, %v2497_v20 }
 0x2a7   : > { %v1768_v53 = vpop.f32.mrb[28].mxu0  ;;  %v1270_v54 = vrot.slane %v1192_v47, %v2505_v36  ;;  %v1214_v55 = vcombine.high %v1192_v47, %v1192_v47  ;;  %v1199_v56 = vrot.slane %v1183_v39, %v2497_v20  ;;  %v1233_v57 = vcombine.high %v1225_v41, %v1225_v41 }
 0x2a8   : > { %v1040_v62 = vpop.f32.mrb[29].mxu0  ;;  %v1213_v63 = vrot.slane %v1185_v48, %v2497_v20  ;;  %v1274_v1 = vrot.slane %v1206_v50, %v2505_v36  ;;  %v1302_v30 = vrot.slane %v1241_v42, %v2505_v36  ;;  %v1216_v4 = vcombine.high %v1206_v50, %v1206_v50 }
 0x2a9   : > { %v1769_v0 = vpop.f32.mrb[30].mxu0  ;;  %v1347_v24 = vsub.f32 %v993_v35, %v1270_v54  ;;  %v1278_v2 = vrot.slane %v1214_v55, %v2505_v36  ;;  %v1286_v5 = vrot.slane %v1199_v56, %v2505_v36  ;;  %v1234_v49 = vcombine.high %v1232_v51, %v1232_v51 }
 0x2aa   : > { %v1052_v3 = vadd.f32 %v1769_v0, %v2495_v19  ;;  %v1043_v37 = vpop.f32.mrb[31].mxu0  ;;  %v1290_v6 = vrot.slane %v1213_v63, %v2505_v36  ;;  %v1348_v43 = vsub.f32 %v996_v45, %v1274_v1  ;;  %v1282_v7 = vrot.slane %v1216_v4, %v2505_v36 }
 0x2ab   : > { %v1363_v33 = vmul.f32 %v1347_v24, %v1347_v24  ;;  %v1349_v10 = vsub.f32 %v1001_v15, %v1278_v2  ;;  %v1351_v9 = vsub.f32 %v1009_v46, %v1286_v5  ;;  %v1215_v59 = vcombine.high %v1199_v56, %v1199_v56 }
 0x2ac   : > { %v1352_v61 = vsub.f32 %v1012_v58, %v1290_v6  ;;  %v1217_v13 = vcombine.high %v1213_v63, %v1213_v63  ;;  %v1355_v16 = vsub.f32 %v1025_v60, %v1302_v30  ;;  %v1041_v18 = vadd.f32 %v2495_v19, %v1040_v62 }
 0x2ad   : > { %1379 = vxpose.xlu0.b32.start [1/16] %v1363_v33, 128  ;;  %v1350_v22 = vsub.f32 %v1004_v38, %v1282_v7  ;;  %v1294_v8 = vrot.slane %v1215_v59, %v2505_v36  ;;  %v1364_v25 = vmul.f32 %v1348_v43, %v1348_v43  ;;  %v1255_v14 = vrot.slane %v1233_v57, %v2497_v20 }
 0x2ae   : > { %v1298_v26 = vrot.slane %v1217_v13, %v2505_v36  ;;  %v1263_v28 = vcombine.high %v1241_v42, %v1241_v42  ;;  %v1044_v23 = vadd.f32 %v2495_v19, %v1043_v37  ;;  %v1248_v27 = vrot.slane %v1232_v51, %v2497_v20 }
 0x2af   : > { %v1353_v29 = vsub.f32 %v1017_v44, %v1294_v8  ;;  %v1262_v31 = vrot.slane %v1234_v49, %v2497_v20  ;;  %v1306_v34 = vrot.slane %v1255_v14, %v2505_v36  ;;  %v1265_v35 = vcombine.high %v1255_v14, %v1255_v14 }
 0x2b0   : > { %v1354_v32 = vsub.f32 %v1020_v52, %v1298_v26  ;;  %v1310_v15 = vrot.slane %v1263_v28, %v2505_v36  ;;  %v1049_v38 = vadd.f32 %v1768_v53, %v2495_v19  ;;  %v1318_v39 = vrot.slane %v1248_v27, %v2505_v36 }
 0x2b1   : > { %1380 = vxpose.xlu0.b32.cont [2/16] %v1364_v25, 128  ;;  %v1322_v21 = vrot.slane %v1262_v31, %v2505_v36  ;;  %v1264_v40 = vcombine.high %v1248_v27, %v1248_v27  ;;  %v1365_v41 = vmul.f32 %v1349_v10, %v1349_v10  ;;  %v1356_v45 = vsub.f32 %v1028_v17, %v1306_v34 }
 0x2b2   : > { %v1357_v44 = vsub.f32 %v1033_v11, %v1310_v15  ;;  %v1314_v46 = vrot.slane %v1265_v35, %v2505_v36  ;;  %v1359_v20 = vsub.f32 %v1041_v18, %v1318_v39  ;;  %v1266_v51 = vcombine.high %v1262_v31, %v1262_v31 }
 0x2b3   : > { %v1360_v47 = vsub.f32 %v1044_v23, %v1322_v21  ;;  %v1326_v48 = vrot.slane %v1264_v40, %v2505_v36  ;;  %v1366_v53 = vmul.f32 %v1350_v22, %v1350_v22  ;;  %v1367_v50 = vmul.f32 %v1351_v9, %v1351_v9 }
 0x2b4   : > { %v1358_v42 = vsub.f32 %v1036_v12, %v1314_v46  ;;  %v1330_v19 = vrot.slane %v1266_v51, %v2505_v36  ;;  %v1368_v55 = vmul.f32 %v1352_v61, %v1352_v61  ;;  %v1369_v56 = vmul.f32 %v1353_v29, %v1353_v29 }
 0x2b5   : > { %1381 = vxpose.xlu0.b32.cont [3/16] %v1365_v41, 128  ;;  %v1361_v52 = vsub.f32 %v1049_v38, %v1326_v48  ;;  %v1370_v57 = vmul.f32 %v1354_v32, %v1354_v32  ;;  %v1371_v58 = vmul.f32 %v1355_v16, %v1355_v16  ;;  %v1372_v60 = vmul.f32 %v1356_v45, %v1356_v45 }
 0x2b6   : > { %v1362_v54 = vsub.f32 %v1052_v3, %v1330_v19  ;;  %v1373_v62 = vmul.f32 %v1357_v44, %v1357_v44  ;;  %v1374_v63 = vmul.f32 %v1358_v42, %v1358_v42  ;;  %v1375_v36 = vmul.f32 %v1359_v20, %v1359_v20 }
 0x2b7   : > { %v1376_v0 = vmul.f32 %v1360_v47, %v1360_v47  ;;  %v1377_v24 = vmul.f32 %v1361_v52, %v1361_v52 }
 0x2b8   : > { %v1378_v1 = vmul.f32 %v1362_v54, %v1362_v54 }
 0x2b9   : > { %1382 = vxpose.xlu0.b32.cont [4/16] %v1366_v53, 128 }
 0x2bd   : > { %1383 = vxpose.xlu0.b32.cont [5/16] %v1367_v50, 128 }
 0x2c1   : > { %1384 = vxpose.xlu0.b32.cont [6/16] %v1368_v55, 128 }
 0x2c5   : > { %1385 = vxpose.xlu0.b32.cont [7/16] %v1369_v56, 128 }
 0x2c9   : > { %1386 = vxpose.xlu0.b32.cont [8/16] %v1370_v57, 128 }
 0x2cd   : > { %1387 = vxpose.xlu0.b32.cont [9/16] %v1371_v58, 128 }
 0x2d1   : > { %1388 = vxpose.xlu0.b32.cont [10/16] %v1372_v60, 128 }
 0x2d5   : > { %1389 = vxpose.xlu0.b32.cont [11/16] %v1373_v62, 128 }
 0x2d9   : > { %1390 = vxpose.xlu0.b32.cont [12/16] %v1374_v63, 128 }
 0x2dd   : > { %1391 = vxpose.xlu0.b32.cont [13/16] %v1375_v36, 128 }
 0x2e1   : > { %1392 = vxpose.xlu0.b32.cont [14/16] %v1376_v0, 128 }
 0x2e5   : > { %1393 = vxpose.xlu0.b32.cont [15/16] %v1377_v24, 128 }
 0x2e9   : > { %1394 = vxpose.xlu0.b32.end [16/16] %v1378_v1, 128 }
 0x32d   : > { %v1395_v2 = vpop.trf.xlu0 }
 0x331   : > { %v1396_v30 = vpop.trf.xlu0 }
 0x332   : > { %v1411_v43 = vadd.f32 %v1396_v30, %v1395_v2 }
 0x335   : > { %v1397_v3 = vpop.trf.xlu0 }
 0x336   : > { %v1412_v10 = vadd.f32 %v1411_v43, %v1397_v3 }
 0x339   : > { %v1398_v37 = vpop.trf.xlu0 }
 0x33a   : > { %v1413_v9 = vadd.f32 %v1412_v10, %v1398_v37 }
 0x33d   : > { %v1399_v4 = vpop.trf.xlu0 }
 0x33e   : > { %v1414_v61 = vadd.f32 %v1413_v9, %v1399_v4 }
 0x341   : > { %v1400_v5 = vpop.trf.xlu0 }
 0x342   : > { %v1415_v11 = vadd.f32 %v1414_v61, %v1400_v5 }
 0x345   : > { %v1401_v6 = vpop.trf.xlu0 }
 0x346   : > { %v1416_v12 = vadd.f32 %v1415_v11, %v1401_v6 }
 0x349   : > { %v1402_v49 = vpop.trf.xlu0 }
 0x34a   : > { %v1417_v16 = vadd.f32 %v1416_v12, %v1402_v49 }
 0x34d   : > { %v1403_v33 = vpop.trf.xlu0 }
 0x34e   : > { %v1418_v17 = vadd.f32 %v1417_v16, %v1403_v33 }
 0x351   : > { %v1404_v7 = vpop.trf.xlu0 }
 0x352   : > { %v1419_v22 = vadd.f32 %v1418_v17, %v1404_v7 }
 0x355   : > { %v1405_v59 = vpop.trf.xlu0 }
 0x356   : > { %v1420_v8 = vadd.f32 %v1419_v22, %v1405_v59 }
 0x359   : > { %v1406_v13 = vpop.trf.xlu0 }
 0x35a   : > { %v1421_v26 = vadd.f32 %v1420_v8, %v1406_v13 }
 0x35d   : > { %v1407_v18 = vpop.trf.xlu0 }
 0x35e   : > { %v1422_v14 = vadd.f32 %v1421_v26, %v1407_v18 }
 0x361   : > { %v1408_v25 = vpop.trf.xlu0 }
 0x362   : > { %v1423_v23 = vadd.f32 %v1422_v14, %v1408_v25 }
 0x365   : > { %v1409_v28 = vpop.trf.xlu0 }
 0x366   : > { %v1424_v29 = vadd.f32 %v1423_v23, %v1409_v28 }
 0x369   : > { %v1410_v27 = vpop.trf.xlu0 }
 0x36a   : > { %v1425_v31 = vadd.f32 %v1424_v29, %v1410_v27 }
 0x36c   : > { %v1426_v32 = vrot.slane %v1425_v31, 4 }
 0x36e   : > { %v1427_v34 = vadd.f32 %v1426_v32, %v1425_v31 }
 0x370   : > { %v1428_v15 = vrot.slane %v1427_v34, 2 }
 0x372   : > { %v1429_v35 = vadd.f32 %v1428_v15, %v1427_v34 }
 0x374   : > { %v1430_v38 = vrot.slane %v1429_v35, 1 }
 0x376   : > { %v1431_v39 = vadd.f32 %v1430_v38, %v1429_v35 }
 0x378   : > { %1899 = vrsqrt.f32 %v1431_v39  ;;  %vm1434_vm8 = vcmp.eq.f32.partialorder %v1431_v39, inf  ;;  %v1437_v41 = vand.u32 2147483648, %v1431_v39  ;;  %vm1436_vm9 = vcmp.eq.f32.partialorder %v1431_v39, 0.0 }
 0x382   : > { %v1900_v21 = vpop.eup %1899 }
 0x383   : > { %v1433_v40 = vmul.f32 %v1900_v21, %v1431_v39 }
 0x385   : > { %v1435_v45 = vsel %vm1434_vm8, %v1431_v39, %v1433_v40 }
 0x386   : > { %v1438_v44 = vsel %vm1436_vm9, %v1437_v41, %v1435_v45 }
 0x387   : > { %v1439_v46 = vsub.f32 0.0, %v1438_v44 }
 0x389   : > { %1440 = vst [vmem:[%s337_s4] sm:$0x1] %v1439_v46 }
 0x38a   : > { %2030 = shalt.err (!%p2027_p11)
}
 0x38b   : > { %s2031_s26 = scalar_lea.hbm %s2552_s17, 16  ;;  %s2035_s18 = scalar_lea.hbm %s2601_s6, 64 }
 0x38c   : > { %p2032_p0 = scmp.ne.s32.totalorder %s2552_s17, %s2031_s26  ;;  %p2036_p13 = scmp.lt.u32.totalorder %s2552_s17, %s2601_s6 }
 0x38d   : > { %p2037_p3 = scmp.lt.u32.totalorder %s2035_s18, %s2031_s26  ;;  %p2039_p9 = scmp.lt.u32.totalorder %s2031_s26, %s2552_s17 }
 0x38e   : > { %p2033_p2 = pnand %p2032_p0, %p2260_p6 }
 0x38f   : > { %p2038_p7 = por %p2037_p3, %p2036_p13 }
 0x390   : > { %p2034_p10 = pneg %p2033_p2 }
 0x391   : > { %p2040_p12 = por %p2039_p9, %p2038_p7 }
 0x393   : > { %p2041_p5 = pnand %p2040_p12, %p2034_p10 }
 0x395   : > { %2044 = shalt.err (!%p2041_p5)
}
 0x396   : > { %1802 = dma.vmem_to_hbm [thread:$0]  (%p2260_p6), %s2554_s13, 16, %s2552_s17, %s1442_s0  }
 0x397 PF: > { %p1827_p1 = scmp.ge.s32.totalorder %s2095_s24, 2  ;;  %s1466_s15 = sand.u32 1, %s2083_s21  }
 0x398   : > { %p2630_p4 = scmp.ne.s32.totalorder %s2613_s28, 0  ;;  %s1467_s7 = scalar_lea.sflag [#allocation4], %s1466_s15 }
 0x39a   : > { %p1819_p8 = pnand %p1827_p1, %p2630_p4 }
 0x39c   : > { %2078 = dma.done.wait (!%p1819_p8), %s1467_s7, 16  }
 0x39d   : > { %2080 = vsyncadd (!%p1819_p8), %s1467_s7, 4294967280  ;;  %p23_p11 = scmp.ge.s32.totalorder %s2250_s8, 6   ;;  %s2631_s21 = smov %s2087_s22 }
 0x39e   : > { %s2632_s22 = smov %s2091_s23  ;;  %s2633_s23 = smov %s2266_s11 }
 0x39f   : > { %s2634_s24 = smov %s2250_s8  ;;  %25 = sbr.rel (!%p23_p11) target bundleno = 12 (0xc), region = 110 }
 0x3a6   :  { %1471 = vsyncpa [#allocation3], 1 }
 0x3a7   :  { %1473 = vsyncpa [#allocation3 + $0x1], 1 }
 0x3a8   :  { %1474 = vsyncpa [#allocation6], 1 }
 0x3a9   :  { %1476 = vsyncpa [#allocation6 + $0x1], 1 }
 0x3aa   :  { %1477 = vsyncpa [#allocation9], 1 }
 0x3ab   :  { %1478 = vsyncpa [#allocation4], 1 }
 0x3ac   :  { %1480 = vsyncpa [#allocation4 + $0x1], 1 }

</bundles_post_ra>
